<compile_context>
chip_gen: v7x
topology: tpu7x:2x2x1
jax: 0.10.0
libtpu: 0.0.40
codegen_flags: <defaults>
</compile_context>

<pallas_src>
import functools

import jax
import jax.numpy as jnp
from jax.experimental import pallas as pl
from jax.experimental.pallas import tpu as pltpu


def _round_up(x, m):
    return ((x + m - 1) // m) * m


def _pick_vocab_tile(vp):
    for tv in (1024, 512, 256, 128):
        if vp % tv == 0:
            return tv
    return vp


def _fused_layer_kernel(x_ref, kv_ref,
                        wq_ref, wk_ref, wv_ref, bq_ref, bk_ref, bv_ref,
                        wo_ref, bo_ref,
                        g1_ref, b1_ref,
                        wf1_ref, bf1_ref, wf2_ref, bf2_ref,
                        g2_ref, b2_ref,
                        wout_ref, bout_ref,
                        logits_ref, ent_ref,
                        out_scratch,
                        *, num_heads):
    # Attention + FFN run once (vocab tile 0); the pre-logits are stashed in a
    # bf16 VMEM scratch that every vocab tile reuses.
    @pl.when(pl.program_id(0) == 0)
    def _():
        x = x_ref[...]                                    # (S, E) f32 queries
        kv = kv_ref[...]                                  # (L, E) f32 keys/values
        S, E = x.shape
        L = kv.shape[0]
        H = num_heads
        D = E // H
        scale = 1.0 / (D ** 0.5)

        x_bf = x.astype(jnp.bfloat16)
        kv_bf = kv.astype(jnp.bfloat16)

        # Full-width projections, done once; biases hoisted out of the head loop.
        q = jnp.dot(x_bf, wq_ref[...], preferred_element_type=jnp.float32) + bq_ref[...]
        k = jnp.dot(kv_bf, wk_ref[...], preferred_element_type=jnp.float32) + bk_ref[...]
        v = jnp.dot(kv_bf, wv_ref[...], preferred_element_type=jnp.float32) + bv_ref[...]
        q_bf = q.astype(jnp.bfloat16)
        k_bf = k.astype(jnp.bfloat16)
        v_bf = v.astype(jnp.bfloat16)

        aw_sum = jnp.zeros((S, L), jnp.float32)           # sum of per-head attn weights
        attn_acc = jnp.zeros((S, E), jnp.float32)         # out-projected attention accum
        for h in range(H):                                # static head loop
            lo, hi = h * D, (h + 1) * D
            # scores (S, L): contract on the head dim (no explicit transpose)
            s = jax.lax.dot_general(q_bf[:, lo:hi], k_bf[:, lo:hi],
                                    (((1,), (1,)), ((), ())),
                                    preferred_element_type=jnp.float32) * scale
            s = s - jnp.max(s, axis=-1, keepdims=True)
            p = jnp.exp(s)                                # f32 VPU/EUP math
            p = p * pl.reciprocal(jnp.sum(p, axis=-1, keepdims=True), approx=True)
            aw_sum = aw_sum + p
            o_h = jnp.dot(p.astype(jnp.bfloat16), v_bf[:, lo:hi],
                          preferred_element_type=jnp.float32)          # (S, D)
            # concat-of-heads @ Wo == sum_h o_h @ Wo[rows of head h]
            attn_acc = attn_acc + jnp.dot(o_h.astype(jnp.bfloat16), wo_ref[lo:hi, :],
                                          preferred_element_type=jnp.float32)

        attn_out = attn_acc + bo_ref[...]

        def layer_norm(vv, gamma, beta):
            mu = jnp.mean(vv, axis=-1, keepdims=True)
            var = jnp.mean(jnp.square(vv - mu), axis=-1, keepdims=True)
            return (vv - mu) * jax.lax.rsqrt(var + 1e-5) * gamma + beta

        x2 = layer_norm(x + attn_out, g1_ref[...], b1_ref[...])
        hidden = jnp.maximum(
            jnp.dot(x2.astype(jnp.bfloat16), wf1_ref[...],
                    preferred_element_type=jnp.float32) + bf1_ref[...], 0.0)
        ff = jnp.dot(hidden.astype(jnp.bfloat16), wf2_ref[...],
                     preferred_element_type=jnp.float32) + bf2_ref[...]
        out = layer_norm(x2 + ff, g2_ref[...], b2_ref[...])
        out_scratch[...] = out.astype(jnp.bfloat16)

        # Entropy of the head-AVERAGED attention weights (matches torch:
        # attn_w.mean(dim=1)[0] then -(aw * log(aw + eps)).sum(-1)).
        aw = aw_sum * (1.0 / H)
        ent = -jnp.sum(aw * jnp.log(aw + 1e-10), axis=-1, keepdims=True)   # (S, 1)
        ent_ref[...] = jnp.broadcast_to(ent, ent_ref.shape)                # lane-dense store

    # Per vocab tile: pre-logits (bf16, VMEM-resident) @ this w_out tile.
    logits_ref[...] = (jnp.dot(out_scratch[...], wout_ref[...],
                               preferred_element_type=jnp.float32) + bout_ref[...])


def fused_layer(x, kv, params, num_heads):
    """x: (S, E) queries, kv: (L, E) keys/values.

    Returns (padded logits (S, VP) f32, entropy (S,) f32).
    """
    S, E = x.shape
    L = kv.shape[0]
    VP = params["w_out"].shape[1]                 # vocab padded to a multiple of 128
    TV = _pick_vocab_tile(VP)
    n_tiles = VP // TV

    def full(shape):
        return pl.BlockSpec(shape, lambda j: (0, 0))   # resident across the vocab axis

    kernel = functools.partial(_fused_layer_kernel, num_heads=num_heads)
    grid_spec = pltpu.PrefetchScalarGridSpec(
        num_scalar_prefetch=0,
        grid=(n_tiles,),
        in_specs=[
            full((S, E)), full((L, E)),
            full((E, E)), full((E, E)), full((E, E)),
            full((1, E)), full((1, E)), full((1, E)),
            full((E, E)), full((1, E)),
            full((1, E)), full((1, E)),
            full((E, 4 * E)), full((1, 4 * E)),
            full((4 * E, E)), full((1, E)),
            full((1, E)), full((1, E)),
            pl.BlockSpec((E, TV), lambda j: (0, j)),   # w_out tile (double-buffered DMA)
            pl.BlockSpec((1, TV), lambda j: (0, j)),   # b_out tile
        ],
        out_specs=(
            pl.BlockSpec((S, TV), lambda j: (0, j)),   # lane-dense logits tile
            pl.BlockSpec((S, 128), lambda j: (0, 0)),  # lane-dense entropy slab
        ),
        scratch_shapes=[pltpu.VMEM((S, E), jnp.bfloat16)],   # pre-logits stash
    )
    logits_pad, ent_pad = pl.pallas_call(
        kernel,
        out_shape=(jax.ShapeDtypeStruct((S, VP), jnp.float32),
                   jax.ShapeDtypeStruct((S, 128), jnp.float32)),
        grid_spec=grid_spec,
        compiler_params=pltpu.CompilerParams(
            # "arbitrary": later vocab tiles consume the VMEM scratch written at
            # tile 0, so this axis must run in order on a single core.
            dimension_semantics=("arbitrary",),
            vmem_limit_bytes=32 * 1024 * 1024,
        ),
    )(x, kv,
      params["wq"], params["wk"], params["wv"],
      params["bq"], params["bk"], params["bv"],
      params["wo"], params["bo"],
      params["g1"], params["b1"],
      params["wf1"], params["bf1"], params["wf2"], params["bf2"],
      params["g2"], params["b2"],
      params["w_out"], params["b_out"])
    return logits_pad, ent_pad[:, 0]


@functools.partial(jax.jit, static_argnames=("num_heads", "mem_size", "vocab_size"))
def transformer_xl_forward(params, tokens, mem_x, mem_ent, *,
                           num_heads, mem_size, vocab_size):
    """tokens: (1, S) int32.  Mirrors TransformerXLModel.forward (batch = 1)."""
    emb = jnp.take(params["embed"], tokens, axis=0)            # (1, S, E)
    x = emb[0]                                                 # (S, E)
    kv = x if mem_x is None else jnp.concatenate([mem_x, x], axis=0)

    logits_pad, ent = fused_layer(x, kv, params, num_heads)
    logits = logits_pad[None, :, :vocab_size]                  # strip vocab padding

    x_det = jax.lax.stop_gradient(x)
    ent = jax.lax.stop_gradient(ent)
    if mem_x is None:
        mem_x_new, mem_ent_new = x_det, ent
    else:
        mem_x_new = jnp.concatenate([mem_x, x_det], axis=0)
        mem_ent_new = jnp.concatenate([mem_ent, ent], axis=0)

    eps = 1e-10
    total_ent = jnp.sum(mem_ent_new) + eps                     # device scalar, no host sync
    if mem_x_new.shape[0] > mem_size:
        # TODO(synk): top-k memory eviction kept in plain JAX (data-dependent gather/sort).
        vals, idx = jax.lax.top_k(mem_ent_new, mem_size)
        ratio = jnp.sum(vals) / total_ent
        mem_x_new = mem_x_new[idx]
        mem_ent_new = mem_ent_new[idx]
    else:
        ratio = jnp.float32(1.0)
    return logits, mem_x_new, mem_ent_new, ratio


def init_params(key, vocab_size, embed_dim, padded_vocab):
    E = embed_dim
    ks = jax.random.split(key, 16)
    bf = jnp.bfloat16

    def nrm(k, shape, scale=0.02, dtype=jnp.float32):
        return (scale * jax.random.normal(k, shape)).astype(dtype)

    w_out = nrm(ks[13], (E, vocab_size))
    b_out = nrm(ks[14], (1, vocab_size), 0.01)
    pad = padded_vocab - vocab_size
    return {
        "embed": nrm(ks[0], (vocab_size, E), 1.0),
        # matmul weights stored pre-transposed (in_features, out_features), bf16
        "wq": nrm(ks[1], (E, E), dtype=bf), "wk": nrm(ks[2], (E, E), dtype=bf),
        "wv": nrm(ks[3], (E, E), dtype=bf),
        "bq": nrm(ks[4], (1, E), 0.01),
        "bk": nrm(ks[5], (1, E), 0.01),
        "bv": nrm(ks[6], (1, E), 0.01),
        "wo": nrm(ks[7], (E, E), dtype=bf), "bo": nrm(ks[8], (1, E), 0.01),
        "g1": jnp.ones((1, E), jnp.float32), "b1": jnp.zeros((1, E), jnp.float32),
        "wf1": nrm(ks[9], (E, 4 * E), dtype=bf), "bf1": nrm(ks[10], (1, 4 * E), 0.01),
        "wf2": nrm(ks[11], (4 * E, E), dtype=bf), "bf2": nrm(ks[12], (1, E), 0.01),
        "g2": jnp.ones((1, E), jnp.float32), "b2": jnp.zeros((1, E), jnp.float32),
        # vocab projection zero-padded to a lane-dense multiple of 128
        "w_out": jnp.pad(w_out, ((0, 0), (0, pad))).astype(bf),
        "b_out": jnp.pad(b_out, ((0, 0), (0, pad))),
    }


if __name__ == "__main__":
    vocab_size, embed_dim, num_heads, mem_size, seq_len = 50, 32, 4, 16, 8
    padded_vocab = _round_up(vocab_size, 128)

    key = jax.random.PRNGKey(0)
    pkey, tkey = jax.random.split(key)
    params = init_params(pkey, vocab_size, embed_dim, padded_vocab)

    mem_x, mem_ent = None, None
    logits = ratio = None
    # 3 segments: first has no memory, second concatenates, third triggers top-k eviction.
    for _ in range(3):
        tkey, sub = jax.random.split(tkey)
        tokens = jax.random.randint(sub, (1, seq_len), 0, vocab_size, dtype=jnp.int32)
        logits, mem_x, mem_ent, ratio = transformer_xl_forward(
            params, tokens, mem_x, mem_ent,
            num_heads=num_heads, mem_size=mem_size, vocab_size=vocab_size)

    jax.block_until_ready((logits, mem_x, mem_ent, ratio))
    assert logits.shape == (1, seq_len, vocab_size)
    assert mem_x.shape == (mem_size, embed_dim)
    assert mem_ent.shape == (mem_size,)
    assert 0.0 < float(ratio) <= 1.0
    print("KERNEL_OK")
</pallas_src>

<mosaic_0001>
module attributes {stable_mosaic.version = 11 : i64} {
  func.func @_fused_layer_kernel(%arg0: i32, %arg1: memref<8x32xf32, #tpu.memory_space<vmem>>, %arg2: memref<8x32xf32, #tpu.memory_space<vmem>>, %arg3: memref<32x32xbf16, #tpu.memory_space<vmem>>, %arg4: memref<32x32xbf16, #tpu.memory_space<vmem>>, %arg5: memref<32x32xbf16, #tpu.memory_space<vmem>>, %arg6: memref<1x32xf32, #tpu.memory_space<vmem>>, %arg7: memref<1x32xf32, #tpu.memory_space<vmem>>, %arg8: memref<1x32xf32, #tpu.memory_space<vmem>>, %arg9: memref<32x32xbf16, #tpu.memory_space<vmem>>, %arg10: memref<1x32xf32, #tpu.memory_space<vmem>>, %arg11: memref<1x32xf32, #tpu.memory_space<vmem>>, %arg12: memref<1x32xf32, #tpu.memory_space<vmem>>, %arg13: memref<32x128xbf16, #tpu.memory_space<vmem>>, %arg14: memref<1x128xf32, #tpu.memory_space<vmem>>, %arg15: memref<128x32xbf16, #tpu.memory_space<vmem>>, %arg16: memref<1x32xf32, #tpu.memory_space<vmem>>, %arg17: memref<1x32xf32, #tpu.memory_space<vmem>>, %arg18: memref<1x32xf32, #tpu.memory_space<vmem>>, %arg19: memref<32x128xbf16, #tpu.memory_space<vmem>>, %arg20: memref<1x128xf32, #tpu.memory_space<vmem>>, %arg21: memref<8x128xf32, #tpu.memory_space<vmem>>, %arg22: memref<8x128xf32, #tpu.memory_space<vmem>>, %arg23: memref<8x32xbf16, #tpu.memory_space<vmem>>) attributes {dimension_semantics = [#tpu.dimension_semantics<arbitrary>], iteration_bounds = array<i64: 1>, scalar_prefetch = 0 : i64, scratch_operands = 1 : i64, tpu.core_type = #tpu.core_type<tc>, window_params = [{pipeline_mode = #tpu.pipeline_mode<synchronous>, transform_indices = @transform_0, window_bounds = array<i64: 8, 32>}, {pipeline_mode = #tpu.pipeline_mode<synchronous>, transform_indices = @transform_1, window_bounds = array<i64: 8, 32>}, {pipeline_mode = #tpu.pipeline_mode<synchronous>, transform_indices = @transform_2, window_bounds = array<i64: 32, 32>}, {pipeline_mode = #tpu.pipeline_mode<synchronous>, transform_indices = @transform_3, window_bounds = array<i64: 32, 32>}, {pipeline_mode = #tpu.pipeline_mode<synchronous>, transform_indices = @transform_4, window_bounds = array<i64: 32, 32>}, {pipeline_mode = #tpu.pipeline_mode<synchronous>, transform_indices = @transform_5, window_bounds = array<i64: 1, 32>}, {pipeline_mode = #tpu.pipeline_mode<synchronous>, transform_indices = @transform_6, window_bounds = array<i64: 1, 32>}, {pipeline_mode = #tpu.pipeline_mode<synchronous>, transform_indices = @transform_7, window_bounds = array<i64: 1, 32>}, {pipeline_mode = #tpu.pipeline_mode<synchronous>, transform_indices = @transform_8, window_bounds = array<i64: 32, 32>}, {pipeline_mode = #tpu.pipeline_mode<synchronous>, transform_indices = @transform_9, window_bounds = array<i64: 1, 32>}, {pipeline_mode = #tpu.pipeline_mode<synchronous>, transform_indices = @transform_10, window_bounds = array<i64: 1, 32>}, {pipeline_mode = #tpu.pipeline_mode<synchronous>, transform_indices = @transform_11, window_bounds = array<i64: 1, 32>}, {pipeline_mode = #tpu.pipeline_mode<synchronous>, transform_indices = @transform_12, window_bounds = array<i64: 32, 128>}, {pipeline_mode = #tpu.pipeline_mode<synchronous>, transform_indices = @transform_13, window_bounds = array<i64: 1, 128>}, {pipeline_mode = #tpu.pipeline_mode<synchronous>, transform_indices = @transform_14, window_bounds = array<i64: 128, 32>}, {pipeline_mode = #tpu.pipeline_mode<synchronous>, transform_indices = @transform_15, window_bounds = array<i64: 1, 32>}, {pipeline_mode = #tpu.pipeline_mode<synchronous>, transform_indices = @transform_16, window_bounds = array<i64: 1, 32>}, {pipeline_mode = #tpu.pipeline_mode<synchronous>, transform_indices = @transform_17, window_bounds = array<i64: 1, 32>}, {transform_indices = @transform_18, window_bounds = array<i64: 32, 128>}, {transform_indices = @transform_19, window_bounds = array<i64: 1, 128>}, {transform_indices = @transform_20, window_bounds = array<i64: 8, 128>}, {pipeline_mode = #tpu.pipeline_mode<synchronous>, transform_indices = @transform_21, window_bounds = array<i64: 8, 128>}]} {
    %c0_i32 = arith.constant 0 : i32
    %0 = arith.cmpi eq, %arg0, %c0_i32 : i32
    %1 = arith.extui %0 : i1 to i32
    %c0_i32_0 = arith.constant 0 : i32
    %2 = arith.cmpi ne, %1, %c0_i32_0 : i32
    scf.if %2 {
      %c0_8 = arith.constant 0 : index
      %c0_9 = arith.constant 0 : index
      %10 = vector.load %arg1[%c0_8, %c0_9] : memref<8x32xf32, #tpu.memory_space<vmem>>, vector<8x32xf32>
      %c0_10 = arith.constant 0 : index
      %c0_11 = arith.constant 0 : index
      %11 = vector.load %arg2[%c0_10, %c0_11] : memref<8x32xf32, #tpu.memory_space<vmem>>, vector<8x32xf32>
      %12 = arith.truncf %10 : vector<8x32xf32> to vector<8x32xbf16>
      %13 = arith.truncf %11 : vector<8x32xf32> to vector<8x32xbf16>
      %c0_12 = arith.constant 0 : index
      %c0_13 = arith.constant 0 : index
      %14 = vector.load %arg3[%c0_12, %c0_13] : memref<32x32xbf16, #tpu.memory_space<vmem>>, vector<32x32xbf16>
      %cst_14 = arith.constant dense<0.000000e+00> : vector<8x32xf32>
      %15 = tpu.matmul %12, %14, %cst_14 {dimension_numbers = #tpu.dot_dimension_numbers<[1], [0], [0], [1], [0, 0, 1, 1], [], []>} : vector<8x32xbf16>, vector<32x32xbf16>, vector<8x32xf32> -> vector<8x32xf32>
      %c0_15 = arith.constant 0 : index
      %c0_16 = arith.constant 0 : index
      %16 = vector.load %arg6[%c0_15, %c0_16] : memref<1x32xf32, #tpu.memory_space<vmem>>, vector<1x32xf32>
      %17 = vector.broadcast %16 : vector<1x32xf32> to vector<8x32xf32>
      %18 = arith.addf %15, %17 : vector<8x32xf32>
      %c0_17 = arith.constant 0 : index
      %c0_18 = arith.constant 0 : index
      %19 = vector.load %arg4[%c0_17, %c0_18] : memref<32x32xbf16, #tpu.memory_space<vmem>>, vector<32x32xbf16>
      %cst_19 = arith.constant dense<0.000000e+00> : vector<8x32xf32>
      %20 = tpu.matmul %13, %19, %cst_19 {dimension_numbers = #tpu.dot_dimension_numbers<[1], [0], [0], [1], [0, 0, 1, 1], [], []>} : vector<8x32xbf16>, vector<32x32xbf16>, vector<8x32xf32> -> vector<8x32xf32>
      %c0_20 = arith.constant 0 : index
      %c0_21 = arith.constant 0 : index
      %21 = vector.load %arg7[%c0_20, %c0_21] : memref<1x32xf32, #tpu.memory_space<vmem>>, vector<1x32xf32>
      %22 = vector.broadcast %21 : vector<1x32xf32> to vector<8x32xf32>
      %23 = arith.addf %20, %22 : vector<8x32xf32>
      %c0_22 = arith.constant 0 : index
      %c0_23 = arith.constant 0 : index
      %24 = vector.load %arg5[%c0_22, %c0_23] : memref<32x32xbf16, #tpu.memory_space<vmem>>, vector<32x32xbf16>
      %cst_24 = arith.constant dense<0.000000e+00> : vector<8x32xf32>
      %25 = tpu.matmul %13, %24, %cst_24 {dimension_numbers = #tpu.dot_dimension_numbers<[1], [0], [0], [1], [0, 0, 1, 1], [], []>} : vector<8x32xbf16>, vector<32x32xbf16>, vector<8x32xf32> -> vector<8x32xf32>
      %c0_25 = arith.constant 0 : index
      %c0_26 = arith.constant 0 : index
      %26 = vector.load %arg8[%c0_25, %c0_26] : memref<1x32xf32, #tpu.memory_space<vmem>>, vector<1x32xf32>
      %27 = vector.broadcast %26 : vector<1x32xf32> to vector<8x32xf32>
      %28 = arith.addf %25, %27 : vector<8x32xf32>
      %29 = arith.truncf %18 : vector<8x32xf32> to vector<8x32xbf16>
      %30 = arith.truncf %23 : vector<8x32xf32> to vector<8x32xbf16>
      %31 = arith.truncf %28 : vector<8x32xf32> to vector<8x32xbf16>
      %cst_27 = arith.constant 0.000000e+00 : f32
      %32 = vector.broadcast %cst_27 : f32 to vector<8x8xf32>
      %cst_28 = arith.constant 0.000000e+00 : f32
      %33 = vector.broadcast %cst_28 : f32 to vector<8x32xf32>
      %34 = vector.extract_strided_slice %29 {offsets = [0, 0], sizes = [8, 8], strides = [1, 1]} : vector<8x32xbf16> to vector<8x8xbf16>
      %35 = vector.extract_strided_slice %30 {offsets = [0, 0], sizes = [8, 8], strides = [1, 1]} : vector<8x32xbf16> to vector<8x8xbf16>
      %cst_29 = arith.constant dense<0.000000e+00> : vector<8x8xf32>
      %36 = tpu.matmul %34, %35, %cst_29 {dimension_numbers = #tpu.dot_dimension_numbers<[1], [1], [0], [0], [0, 0, 1, 0], [], []>} : vector<8x8xbf16>, vector<8x8xbf16>, vector<8x8xf32> -> vector<8x8xf32>
      %cst_30 = arith.constant 0.353553385 : f32
      %37 = vector.broadcast %cst_30 : f32 to vector<8x8xf32>
      %38 = arith.mulf %36, %37 : vector<8x8xf32>
      %cst_31 = arith.constant dense<0xFF800000> : vector<8xf32>
      %39 = vector.multi_reduction <maximumf>, %38, %cst_31 [1] : vector<8x8xf32> to vector<8xf32>
      %40 = vector.shape_cast %39 : vector<8xf32> to vector<8x1xf32>
      %41 = vector.broadcast %40 : vector<8x1xf32> to vector<8x8xf32>
      %42 = arith.subf %38, %41 : vector<8x8xf32>
      %43 = math.exp %42 : vector<8x8xf32>
      %cst_32 = arith.constant dense<0.000000e+00> : vector<8xf32>
      %44 = vector.multi_reduction <add>, %43, %cst_32 [1] : vector<8x8xf32> to vector<8xf32>
      %45 = vector.shape_cast %44 : vector<8xf32> to vector<8x1xf32>
      %46 = tpu.reciprocal %45 {approx = true} : vector<8x1xf32> -> vector<8x1xf32>
      %47 = vector.broadcast %46 : vector<8x1xf32> to vector<8x8xf32>
      %48 = arith.mulf %43, %47 : vector<8x8xf32>
      %49 = arith.addf %32, %48 : vector<8x8xf32>
      %50 = arith.truncf %48 : vector<8x8xf32> to vector<8x8xbf16>
      %51 = vector.extract_strided_slice %31 {offsets = [0, 0], sizes = [8, 8], strides = [1, 1]} : vector<8x32xbf16> to vector<8x8xbf16>
      %cst_33 = arith.constant dense<0.000000e+00> : vector<8x8xf32>
      %52 = tpu.matmul %50, %51, %cst_33 {dimension_numbers = #tpu.dot_dimension_numbers<[1], [0], [0], [1], [0, 0, 1, 1], [], []>} : vector<8x8xbf16>, vector<8x8xbf16>, vector<8x8xf32> -> vector<8x8xf32>
      %53 = arith.truncf %52 : vector<8x8xf32> to vector<8x8xbf16>
      %c0_34 = arith.constant 0 : index
      %c0_35 = arith.constant 0 : index
      %54 = vector.load %arg9[%c0_34, %c0_35] : memref<32x32xbf16, #tpu.memory_space<vmem>>, vector<8x32xbf16>
      %cst_36 = arith.constant dense<0.000000e+00> : vector<8x32xf32>
      %55 = tpu.matmul %53, %54, %cst_36 {dimension_numbers = #tpu.dot_dimension_numbers<[1], [0], [0], [1], [0, 0, 1, 1], [], []>} : vector<8x8xbf16>, vector<8x32xbf16>, vector<8x32xf32> -> vector<8x32xf32>
      %56 = arith.addf %33, %55 : vector<8x32xf32>
      %57 = vector.extract_strided_slice %29 {offsets = [0, 8], sizes = [8, 8], strides = [1, 1]} : vector<8x32xbf16> to vector<8x8xbf16>
      %58 = vector.extract_strided_slice %30 {offsets = [0, 8], sizes = [8, 8], strides = [1, 1]} : vector<8x32xbf16> to vector<8x8xbf16>
      %cst_37 = arith.constant dense<0.000000e+00> : vector<8x8xf32>
      %59 = tpu.matmul %57, %58, %cst_37 {dimension_numbers = #tpu.dot_dimension_numbers<[1], [1], [0], [0], [0, 0, 1, 0], [], []>} : vector<8x8xbf16>, vector<8x8xbf16>, vector<8x8xf32> -> vector<8x8xf32>
      %cst_38 = arith.constant 0.353553385 : f32
      %60 = vector.broadcast %cst_38 : f32 to vector<8x8xf32>
      %61 = arith.mulf %59, %60 : vector<8x8xf32>
      %cst_39 = arith.constant dense<0xFF800000> : vector<8xf32>
      %62 = vector.multi_reduction <maximumf>, %61, %cst_39 [1] : vector<8x8xf32> to vector<8xf32>
      %63 = vector.shape_cast %62 : vector<8xf32> to vector<8x1xf32>
      %64 = vector.broadcast %63 : vector<8x1xf32> to vector<8x8xf32>
      %65 = arith.subf %61, %64 : vector<8x8xf32>
      %66 = math.exp %65 : vector<8x8xf32>
      %cst_40 = arith.constant dense<0.000000e+00> : vector<8xf32>
      %67 = vector.multi_reduction <add>, %66, %cst_40 [1] : vector<8x8xf32> to vector<8xf32>
      %68 = vector.shape_cast %67 : vector<8xf32> to vector<8x1xf32>
      %69 = tpu.reciprocal %68 {approx = true} : vector<8x1xf32> -> vector<8x1xf32>
      %70 = vector.broadcast %69 : vector<8x1xf32> to vector<8x8xf32>
      %71 = arith.mulf %66, %70 : vector<8x8xf32>
      %72 = arith.addf %49, %71 : vector<8x8xf32>
      %73 = arith.truncf %71 : vector<8x8xf32> to vector<8x8xbf16>
      %74 = vector.extract_strided_slice %31 {offsets = [0, 8], sizes = [8, 8], strides = [1, 1]} : vector<8x32xbf16> to vector<8x8xbf16>
      %cst_41 = arith.constant dense<0.000000e+00> : vector<8x8xf32>
      %75 = tpu.matmul %73, %74, %cst_41 {dimension_numbers = #tpu.dot_dimension_numbers<[1], [0], [0], [1], [0, 0, 1, 1], [], []>} : vector<8x8xbf16>, vector<8x8xbf16>, vector<8x8xf32> -> vector<8x8xf32>
      %76 = arith.truncf %75 : vector<8x8xf32> to vector<8x8xbf16>
      %c8 = arith.constant 8 : index
      %c0_42 = arith.constant 0 : index
      %77 = vector.load %arg9[%c8, %c0_42] : memref<32x32xbf16, #tpu.memory_space<vmem>>, vector<8x32xbf16>
      %cst_43 = arith.constant dense<0.000000e+00> : vector<8x32xf32>
      %78 = tpu.matmul %76, %77, %cst_43 {dimension_numbers = #tpu.dot_dimension_numbers<[1], [0], [0], [1], [0, 0, 1, 1], [], []>} : vector<8x8xbf16>, vector<8x32xbf16>, vector<8x32xf32> -> vector<8x32xf32>
      %79 = arith.addf %56, %78 : vector<8x32xf32>
      %80 = vector.extract_strided_slice %29 {offsets = [0, 16], sizes = [8, 8], strides = [1, 1]} : vector<8x32xbf16> to vector<8x8xbf16>
      %81 = vector.extract_strided_slice %30 {offsets = [0, 16], sizes = [8, 8], strides = [1, 1]} : vector<8x32xbf16> to vector<8x8xbf16>
      %cst_44 = arith.constant dense<0.000000e+00> : vector<8x8xf32>
      %82 = tpu.matmul %80, %81, %cst_44 {dimension_numbers = #tpu.dot_dimension_numbers<[1], [1], [0], [0], [0, 0, 1, 0], [], []>} : vector<8x8xbf16>, vector<8x8xbf16>, vector<8x8xf32> -> vector<8x8xf32>
      %cst_45 = arith.constant 0.353553385 : f32
      %83 = vector.broadcast %cst_45 : f32 to vector<8x8xf32>
      %84 = arith.mulf %82, %83 : vector<8x8xf32>
      %cst_46 = arith.constant dense<0xFF800000> : vector<8xf32>
      %85 = vector.multi_reduction <maximumf>, %84, %cst_46 [1] : vector<8x8xf32> to vector<8xf32>
      %86 = vector.shape_cast %85 : vector<8xf32> to vector<8x1xf32>
      %87 = vector.broadcast %86 : vector<8x1xf32> to vector<8x8xf32>
      %88 = arith.subf %84, %87 : vector<8x8xf32>
      %89 = math.exp %88 : vector<8x8xf32>
      %cst_47 = arith.constant dense<0.000000e+00> : vector<8xf32>
      %90 = vector.multi_reduction <add>, %89, %cst_47 [1] : vector<8x8xf32> to vector<8xf32>
      %91 = vector.shape_cast %90 : vector<8xf32> to vector<8x1xf32>
      %92 = tpu.reciprocal %91 {approx = true} : vector<8x1xf32> -> vector<8x1xf32>
      %93 = vector.broadcast %92 : vector<8x1xf32> to vector<8x8xf32>
      %94 = arith.mulf %89, %93 : vector<8x8xf32>
      %95 = arith.addf %72, %94 : vector<8x8xf32>
      %96 = arith.truncf %94 : vector<8x8xf32> to vector<8x8xbf16>
      %97 = vector.extract_strided_slice %31 {offsets = [0, 16], sizes = [8, 8], strides = [1, 1]} : vector<8x32xbf16> to vector<8x8xbf16>
      %cst_48 = arith.constant dense<0.000000e+00> : vector<8x8xf32>
      %98 = tpu.matmul %96, %97, %cst_48 {dimension_numbers = #tpu.dot_dimension_numbers<[1], [0], [0], [1], [0, 0, 1, 1], [], []>} : vector<8x8xbf16>, vector<8x8xbf16>, vector<8x8xf32> -> vector<8x8xf32>
      %99 = arith.truncf %98 : vector<8x8xf32> to vector<8x8xbf16>
      %c16 = arith.constant 16 : index
      %c0_49 = arith.constant 0 : index
      %100 = vector.load %arg9[%c16, %c0_49] : memref<32x32xbf16, #tpu.memory_space<vmem>>, vector<8x32xbf16>
      %cst_50 = arith.constant dense<0.000000e+00> : vector<8x32xf32>
      %101 = tpu.matmul %99, %100, %cst_50 {dimension_numbers = #tpu.dot_dimension_numbers<[1], [0], [0], [1], [0, 0, 1, 1], [], []>} : vector<8x8xbf16>, vector<8x32xbf16>, vector<8x32xf32> -> vector<8x32xf32>
      %102 = arith.addf %79, %101 : vector<8x32xf32>
      %103 = vector.extract_strided_slice %29 {offsets = [0, 24], sizes = [8, 8], strides = [1, 1]} : vector<8x32xbf16> to vector<8x8xbf16>
      %104 = vector.extract_strided_slice %30 {offsets = [0, 24], sizes = [8, 8], strides = [1, 1]} : vector<8x32xbf16> to vector<8x8xbf16>
      %cst_51 = arith.constant dense<0.000000e+00> : vector<8x8xf32>
      %105 = tpu.matmul %103, %104, %cst_51 {dimension_numbers = #tpu.dot_dimension_numbers<[1], [1], [0], [0], [0, 0, 1, 0], [], []>} : vector<8x8xbf16>, vector<8x8xbf16>, vector<8x8xf32> -> vector<8x8xf32>
      %cst_52 = arith.constant 0.353553385 : f32
      %106 = vector.broadcast %cst_52 : f32 to vector<8x8xf32>
      %107 = arith.mulf %105, %106 : vector<8x8xf32>
      %cst_53 = arith.constant dense<0xFF800000> : vector<8xf32>
      %108 = vector.multi_reduction <maximumf>, %107, %cst_53 [1] : vector<8x8xf32> to vector<8xf32>
      %109 = vector.shape_cast %108 : vector<8xf32> to vector<8x1xf32>
      %110 = vector.broadcast %109 : vector<8x1xf32> to vector<8x8xf32>
      %111 = arith.subf %107, %110 : vector<8x8xf32>
      %112 = math.exp %111 : vector<8x8xf32>
      %cst_54 = arith.constant dense<0.000000e+00> : vector<8xf32>
      %113 = vector.multi_reduction <add>, %112, %cst_54 [1] : vector<8x8xf32> to vector<8xf32>
      %114 = vector.shape_cast %113 : vector<8xf32> to vector<8x1xf32>
      %115 = tpu.reciprocal %114 {approx = true} : vector<8x1xf32> -> vector<8x1xf32>
      %116 = vector.broadcast %115 : vector<8x1xf32> to vector<8x8xf32>
      %117 = arith.mulf %112, %116 : vector<8x8xf32>
      %118 = arith.addf %95, %117 : vector<8x8xf32>
      %119 = arith.truncf %117 : vector<8x8xf32> to vector<8x8xbf16>
      %120 = vector.extract_strided_slice %31 {offsets = [0, 24], sizes = [8, 8], strides = [1, 1]} : vector<8x32xbf16> to vector<8x8xbf16>
      %cst_55 = arith.constant dense<0.000000e+00> : vector<8x8xf32>
      %121 = tpu.matmul %119, %120, %cst_55 {dimension_numbers = #tpu.dot_dimension_numbers<[1], [0], [0], [1], [0, 0, 1, 1], [], []>} : vector<8x8xbf16>, vector<8x8xbf16>, vector<8x8xf32> -> vector<8x8xf32>
      %122 = arith.truncf %121 : vector<8x8xf32> to vector<8x8xbf16>
      %c24 = arith.constant 24 : index
      %c0_56 = arith.constant 0 : index
      %123 = vector.load %arg9[%c24, %c0_56] : memref<32x32xbf16, #tpu.memory_space<vmem>>, vector<8x32xbf16>
      %cst_57 = arith.constant dense<0.000000e+00> : vector<8x32xf32>
      %124 = tpu.matmul %122, %123, %cst_57 {dimension_numbers = #tpu.dot_dimension_numbers<[1], [0], [0], [1], [0, 0, 1, 1], [], []>} : vector<8x8xbf16>, vector<8x32xbf16>, vector<8x32xf32> -> vector<8x32xf32>
      %125 = arith.addf %102, %124 : vector<8x32xf32>
      %c0_58 = arith.constant 0 : index
      %c0_59 = arith.constant 0 : index
      %126 = vector.load %arg10[%c0_58, %c0_59] : memref<1x32xf32, #tpu.memory_space<vmem>>, vector<1x32xf32>
      %127 = vector.broadcast %126 : vector<1x32xf32> to vector<8x32xf32>
      %128 = arith.addf %125, %127 : vector<8x32xf32>
      %129 = arith.addf %10, %128 : vector<8x32xf32>
      %c0_60 = arith.constant 0 : index
      %c0_61 = arith.constant 0 : index
      %130 = vector.load %arg11[%c0_60, %c0_61] : memref<1x32xf32, #tpu.memory_space<vmem>>, vector<1x32xf32>
      %c0_62 = arith.constant 0 : index
      %c0_63 = arith.constant 0 : index
      %131 = vector.load %arg12[%c0_62, %c0_63] : memref<1x32xf32, #tpu.memory_space<vmem>>, vector<1x32xf32>
      %cst_64 = arith.constant dense<0.000000e+00> : vector<8xf32>
      %132 = vector.multi_reduction <add>, %129, %cst_64 [1] : vector<8x32xf32> to vector<8xf32>
      %133 = vector.shape_cast %132 : vector<8xf32> to vector<8x1xf32>
      %cst_65 = arith.constant 3.200000e+01 : f32
      %134 = vector.broadcast %cst_65 : f32 to vector<8x1xf32>
      %135 = arith.divf %133, %134 : vector<8x1xf32>
      %136 = vector.broadcast %135 : vector<8x1xf32> to vector<8x32xf32>
      %137 = arith.subf %129, %136 : vector<8x32xf32>
      %138 = arith.mulf %137, %137 : vector<8x32xf32>
      %cst_66 = arith.constant dense<0.000000e+00> : vector<8xf32>
      %139 = vector.multi_reduction <add>, %138, %cst_66 [1] : vector<8x32xf32> to vector<8xf32>
      %140 = vector.shape_cast %139 : vector<8xf32> to vector<8x1xf32>
      %cst_67 = arith.constant 3.200000e+01 : f32
      %141 = vector.broadcast %cst_67 : f32 to vector<8x1xf32>
      %142 = arith.divf %140, %141 : vector<8x1xf32>
      %143 = vector.broadcast %135 : vector<8x1xf32> to vector<8x32xf32>
      %144 = arith.subf %129, %143 : vector<8x32xf32>
      %cst_68 = arith.constant 9.99999974E-6 : f32
      %145 = vector.broadcast %cst_68 : f32 to vector<8x1xf32>
      %146 = arith.addf %142, %145 : vector<8x1xf32>
      %147 = math.rsqrt %146 : vector<8x1xf32>
      %148 = vector.broadcast %147 : vector<8x1xf32> to vector<8x32xf32>
      %149 = arith.mulf %144, %148 : vector<8x32xf32>
      %150 = vector.broadcast %130 : vector<1x32xf32> to vector<8x32xf32>
      %151 = arith.mulf %149, %150 : vector<8x32xf32>
      %152 = vector.broadcast %131 : vector<1x32xf32> to vector<8x32xf32>
      %153 = arith.addf %151, %152 : vector<8x32xf32>
      %154 = arith.truncf %153 : vector<8x32xf32> to vector<8x32xbf16>
      %c0_69 = arith.constant 0 : index
      %c0_70 = arith.constant 0 : index
      %155 = vector.load %arg13[%c0_69, %c0_70] : memref<32x128xbf16, #tpu.memory_space<vmem>>, vector<32x128xbf16>
      %cst_71 = arith.constant dense<0.000000e+00> : vector<8x128xf32>
      %156 = tpu.matmul %154, %155, %cst_71 {dimension_numbers = #tpu.dot_dimension_numbers<[1], [0], [0], [1], [0, 0, 1, 1], [], []>} : vector<8x32xbf16>, vector<32x128xbf16>, vector<8x128xf32> -> vector<8x128xf32>
      %c0_72 = arith.constant 0 : index
      %c0_73 = arith.constant 0 : index
      %157 = vector.load %arg14[%c0_72, %c0_73] : memref<1x128xf32, #tpu.memory_space<vmem>>, vector<1x128xf32>
      %158 = vector.broadcast %157 : vector<1x128xf32> to vector<8x128xf32>
      %159 = arith.addf %156, %158 : vector<8x128xf32>
      %cst_74 = arith.constant 0.000000e+00 : f32
      %160 = vector.broadcast %cst_74 : f32 to vector<8x128xf32>
      %161 = arith.maximumf %159, %160 : vector<8x128xf32>
      %162 = arith.truncf %161 : vector<8x128xf32> to vector<8x128xbf16>
      %c0_75 = arith.constant 0 : index
      %c0_76 = arith.constant 0 : index
      %163 = vector.load %arg15[%c0_75, %c0_76] : memref<128x32xbf16, #tpu.memory_space<vmem>>, vector<128x32xbf16>
      %cst_77 = arith.constant dense<0.000000e+00> : vector<8x32xf32>
      %164 = tpu.matmul %162, %163, %cst_77 {dimension_numbers = #tpu.dot_dimension_numbers<[1], [0], [0], [1], [0, 0, 1, 1], [], []>} : vector<8x128xbf16>, vector<128x32xbf16>, vector<8x32xf32> -> vector<8x32xf32>
      %c0_78 = arith.constant 0 : index
      %c0_79 = arith.constant 0 : index
      %165 = vector.load %arg16[%c0_78, %c0_79] : memref<1x32xf32, #tpu.memory_space<vmem>>, vector<1x32xf32>
      %166 = vector.broadcast %165 : vector<1x32xf32> to vector<8x32xf32>
      %167 = arith.addf %164, %166 : vector<8x32xf32>
      %168 = arith.addf %153, %167 : vector<8x32xf32>
      %c0_80 = arith.constant 0 : index
      %c0_81 = arith.constant 0 : index
      %169 = vector.load %arg17[%c0_80, %c0_81] : memref<1x32xf32, #tpu.memory_space<vmem>>, vector<1x32xf32>
      %c0_82 = arith.constant 0 : index
      %c0_83 = arith.constant 0 : index
      %170 = vector.load %arg18[%c0_82, %c0_83] : memref<1x32xf32, #tpu.memory_space<vmem>>, vector<1x32xf32>
      %cst_84 = arith.constant dense<0.000000e+00> : vector<8xf32>
      %171 = vector.multi_reduction <add>, %168, %cst_84 [1] : vector<8x32xf32> to vector<8xf32>
      %172 = vector.shape_cast %171 : vector<8xf32> to vector<8x1xf32>
      %cst_85 = arith.constant 3.200000e+01 : f32
      %173 = vector.broadcast %cst_85 : f32 to vector<8x1xf32>
      %174 = arith.divf %172, %173 : vector<8x1xf32>
      %175 = vector.broadcast %174 : vector<8x1xf32> to vector<8x32xf32>
      %176 = arith.subf %168, %175 : vector<8x32xf32>
      %177 = arith.mulf %176, %176 : vector<8x32xf32>
      %cst_86 = arith.constant dense<0.000000e+00> : vector<8xf32>
      %178 = vector.multi_reduction <add>, %177, %cst_86 [1] : vector<8x32xf32> to vector<8xf32>
      %179 = vector.shape_cast %178 : vector<8xf32> to vector<8x1xf32>
      %cst_87 = arith.constant 3.200000e+01 : f32
      %180 = vector.broadcast %cst_87 : f32 to vector<8x1xf32>
      %181 = arith.divf %179, %180 : vector<8x1xf32>
      %182 = vector.broadcast %174 : vector<8x1xf32> to vector<8x32xf32>
      %183 = arith.subf %168, %182 : vector<8x32xf32>
      %cst_88 = arith.constant 9.99999974E-6 : f32
      %184 = vector.broadcast %cst_88 : f32 to vector<8x1xf32>
      %185 = arith.addf %181, %184 : vector<8x1xf32>
      %186 = math.rsqrt %185 : vector<8x1xf32>
      %187 = vector.broadcast %186 : vector<8x1xf32> to vector<8x32xf32>
      %188 = arith.mulf %183, %187 : vector<8x32xf32>
      %189 = vector.broadcast %169 : vector<1x32xf32> to vector<8x32xf32>
      %190 = arith.mulf %188, %189 : vector<8x32xf32>
      %191 = vector.broadcast %170 : vector<1x32xf32> to vector<8x32xf32>
      %192 = arith.addf %190, %191 : vector<8x32xf32>
      %193 = arith.truncf %192 : vector<8x32xf32> to vector<8x32xbf16>
      %c0_89 = arith.constant 0 : index
      %c0_90 = arith.constant 0 : index
      %194 = vector.load %arg23[%c0_89, %c0_90] : memref<8x32xbf16, #tpu.memory_space<vmem>>, vector<8x32xbf16>
      tpu.vector_store %arg23[%c0_89, %c0_90], %193 {strides = array<i32>} : memref<8x32xbf16, #tpu.memory_space<vmem>>, vector<8x32xbf16>,
      %cst_91 = arith.constant 2.500000e-01 : f32
      %195 = vector.broadcast %cst_91 : f32 to vector<8x8xf32>
      %196 = arith.mulf %118, %195 : vector<8x8xf32>
      %cst_92 = arith.constant 1.000000e-10 : f32
      %197 = vector.broadcast %cst_92 : f32 to vector<8x8xf32>
      %198 = arith.addf %196, %197 : vector<8x8xf32>
      %199 = math.log %198 : vector<8x8xf32>
      %200 = arith.mulf %196, %199 : vector<8x8xf32>
      %cst_93 = arith.constant dense<0.000000e+00> : vector<8xf32>
      %201 = vector.multi_reduction <add>, %200, %cst_93 [1] : vector<8x8xf32> to vector<8xf32>
      %202 = vector.shape_cast %201 : vector<8xf32> to vector<8x1xf32>
      %cst_94 = arith.constant 0.000000e+00 : f32
      %203 = vector.broadcast %cst_94 : f32 to vector<8x1xf32>
      %204 = arith.subf %203, %202 : vector<8x1xf32>
      %205 = vector.shape_cast %204 : vector<8x1xf32> to vector<8x1xf32>
      %206 = vector.broadcast %205 : vector<8x1xf32> to vector<8x128xf32>
      %c0_95 = arith.constant 0 : index
      %c0_96 = arith.constant 0 : index
      %207 = vector.load %arg22[%c0_95, %c0_96] : memref<8x128xf32, #tpu.memory_space<vmem>>, vector<8x128xf32>
      tpu.vector_store %arg22[%c0_95, %c0_96], %206 {strides = array<i32>} : memref<8x128xf32, #tpu.memory_space<vmem>>, vector<8x128xf32>,
    } else {
    }
    %c0 = arith.constant 0 : index
    %c0_1 = arith.constant 0 : index
    %3 = vector.load %arg23[%c0, %c0_1] : memref<8x32xbf16, #tpu.memory_space<vmem>>, vector<8x32xbf16>
    %c0_2 = arith.constant 0 : index
    %c0_3 = arith.constant 0 : index
    %4 = vector.load %arg19[%c0_2, %c0_3] : memref<32x128xbf16, #tpu.memory_space<vmem>>, vector<32x128xbf16>
    %cst = arith.constant dense<0.000000e+00> : vector<8x128xf32>
    %5 = tpu.matmul %3, %4, %cst {dimension_numbers = #tpu.dot_dimension_numbers<[1], [0], [0], [1], [0, 0, 1, 1], [], []>} : vector<8x32xbf16>, vector<32x128xbf16>, vector<8x128xf32> -> vector<8x128xf32>
    %c0_4 = arith.constant 0 : index
    %c0_5 = arith.constant 0 : index
    %6 = vector.load %arg20[%c0_4, %c0_5] : memref<1x128xf32, #tpu.memory_space<vmem>>, vector<1x128xf32>
    %7 = vector.broadcast %6 : vector<1x128xf32> to vector<8x128xf32>
    %8 = arith.addf %5, %7 : vector<8x128xf32>
    %c0_6 = arith.constant 0 : index
    %c0_7 = arith.constant 0 : index
    %9 = vector.load %arg21[%c0_6, %c0_7] : memref<8x128xf32, #tpu.memory_space<vmem>>, vector<8x128xf32>
    tpu.vector_store %arg21[%c0_6, %c0_7], %8 {strides = array<i32>} : memref<8x128xf32, #tpu.memory_space<vmem>>, vector<8x128xf32>,
    return
  }
  func.func @transform_0(%arg0: i32) -> (i32, i32) {
    %c0_i32 = arith.constant 0 : i32
    %c0_i32_0 = arith.constant 0 : i32
    %c0_i32_1 = arith.constant 0 : i32
    return %c0_i32, %c0_i32_0 : i32, i32
  }
  func.func @transform_1(%arg0: i32) -> (i32, i32) {
    %c0_i32 = arith.constant 0 : i32
    %c0_i32_0 = arith.constant 0 : i32
    %c0_i32_1 = arith.constant 0 : i32
    return %c0_i32, %c0_i32_0 : i32, i32
  }
  func.func @transform_2(%arg0: i32) -> (i32, i32) {
    %c0_i32 = arith.constant 0 : i32
    %c0_i32_0 = arith.constant 0 : i32
    %c0_i32_1 = arith.constant 0 : i32
    return %c0_i32, %c0_i32_0 : i32, i32
  }
  func.func @transform_3(%arg0: i32) -> (i32, i32) {
    %c0_i32 = arith.constant 0 : i32
    %c0_i32_0 = arith.constant 0 : i32
    %c0_i32_1 = arith.constant 0 : i32
    return %c0_i32, %c0_i32_0 : i32, i32
  }
  func.func @transform_4(%arg0: i32) -> (i32, i32) {
    %c0_i32 = arith.constant 0 : i32
    %c0_i32_0 = arith.constant 0 : i32
    %c0_i32_1 = arith.constant 0 : i32
    return %c0_i32, %c0_i32_0 : i32, i32
  }
  func.func @transform_5(%arg0: i32) -> (i32, i32) {
    %c0_i32 = arith.constant 0 : i32
    %c0_i32_0 = arith.constant 0 : i32
    %c0_i32_1 = arith.constant 0 : i32
    return %c0_i32, %c0_i32_0 : i32, i32
  }
  func.func @transform_6(%arg0: i32) -> (i32, i32) {
    %c0_i32 = arith.constant 0 : i32
    %c0_i32_0 = arith.constant 0 : i32
    %c0_i32_1 = arith.constant 0 : i32
    return %c0_i32, %c0_i32_0 : i32, i32
  }
  func.func @transform_7(%arg0: i32) -> (i32, i32) {
    %c0_i32 = arith.constant 0 : i32
    %c0_i32_0 = arith.constant 0 : i32
    %c0_i32_1 = arith.constant 0 : i32
    return %c0_i32, %c0_i32_0 : i32, i32
  }
  func.func @transform_8(%arg0: i32) -> (i32, i32) {
    %c0_i32 = arith.constant 0 : i32
    %c0_i32_0 = arith.constant 0 : i32
    %c0_i32_1 = arith.constant 0 : i32
    return %c0_i32, %c0_i32_0 : i32, i32
  }
  func.func @transform_9(%arg0: i32) -> (i32, i32) {
    %c0_i32 = arith.constant 0 : i32
    %c0_i32_0 = arith.constant 0 : i32
    %c0_i32_1 = arith.constant 0 : i32
    return %c0_i32, %c0_i32_0 : i32, i32
  }
  func.func @transform_10(%arg0: i32) -> (i32, i32) {
    %c0_i32 = arith.constant 0 : i32
    %c0_i32_0 = arith.constant 0 : i32
    %c0_i32_1 = arith.constant 0 : i32
    return %c0_i32, %c0_i32_0 : i32, i32
  }
  func.func @transform_11(%arg0: i32) -> (i32, i32) {
    %c0_i32 = arith.constant 0 : i32
    %c0_i32_0 = arith.constant 0 : i32
    %c0_i32_1 = arith.constant 0 : i32
    return %c0_i32, %c0_i32_0 : i32, i32
  }
  func.func @transform_12(%arg0: i32) -> (i32, i32) {
    %c0_i32 = arith.constant 0 : i32
    %c0_i32_0 = arith.constant 0 : i32
    %c0_i32_1 = arith.constant 0 : i32
    return %c0_i32, %c0_i32_0 : i32, i32
  }
  func.func @transform_13(%arg0: i32) -> (i32, i32) {
    %c0_i32 = arith.constant 0 : i32
    %c0_i32_0 = arith.constant 0 : i32
    %c0_i32_1 = arith.constant 0 : i32
    return %c0_i32, %c0_i32_0 : i32, i32
  }
  func.func @transform_14(%arg0: i32) -> (i32, i32) {
    %c0_i32 = arith.constant 0 : i32
    %c0_i32_0 = arith.constant 0 : i32
    %c0_i32_1 = arith.constant 0 : i32
    return %c0_i32, %c0_i32_0 : i32, i32
  }
  func.func @transform_15(%arg0: i32) -> (i32, i32) {
    %c0_i32 = arith.constant 0 : i32
    %c0_i32_0 = arith.constant 0 : i32
    %c0_i32_1 = arith.constant 0 : i32
    return %c0_i32, %c0_i32_0 : i32, i32
  }
  func.func @transform_16(%arg0: i32) -> (i32, i32) {
    %c0_i32 = arith.constant 0 : i32
    %c0_i32_0 = arith.constant 0 : i32
    %c0_i32_1 = arith.constant 0 : i32
    return %c0_i32, %c0_i32_0 : i32, i32
  }
  func.func @transform_17(%arg0: i32) -> (i32, i32) {
    %c0_i32 = arith.constant 0 : i32
    %c0_i32_0 = arith.constant 0 : i32
    %c0_i32_1 = arith.constant 0 : i32
    return %c0_i32, %c0_i32_0 : i32, i32
  }
  func.func @transform_18(%arg0: i32) -> (i32, i32) {
    %c0_i32 = arith.constant 0 : i32
    %c0_i32_0 = arith.constant 0 : i32
    return %c0_i32, %arg0 : i32, i32
  }
  func.func @transform_19(%arg0: i32) -> (i32, i32) {
    %c0_i32 = arith.constant 0 : i32
    %c0_i32_0 = arith.constant 0 : i32
    return %c0_i32, %arg0 : i32, i32
  }
  func.func @transform_20(%arg0: i32) -> (i32, i32) {
    %c0_i32 = arith.constant 0 : i32
    %c0_i32_0 = arith.constant 0 : i32
    return %c0_i32, %arg0 : i32, i32
  }
  func.func @transform_21(%arg0: i32) -> (i32, i32) {
    %c0_i32 = arith.constant 0 : i32
    %c0_i32_0 = arith.constant 0 : i32
    %c0_i32_1 = arith.constant 0 : i32
    return %c0_i32, %c0_i32_0 : i32, i32
  }
}

</mosaic_0001>

<bundles_post_ra>
// kernel: transformer_xl_forward.1
= control target key start
LH: loop header
LB: loop body
LE: loop exit
PB: predicated region body
PF: predicated region fallthrough
CT: control target
= control target key end

     0   :  { %v1526_v0 = vmov 0.0   ;;  %vm1527_vm0 = vmmov 0   ;;  %vm99_vm1 = vcmask 261120   ;;  %vm275_vm2 = vcmask 64512   ;;  %s1900_s2 = inlined_call_operand.vmem [shape: bf16[32,32], index: 2, kind: input, shape index: {}]   ;;  %s1901_s0 = inlined_call_operand.vmem [shape: f32[8,32], index: 0, kind: input, shape index: {}, may-alias: {0,1}]   ;;  %s1902_s3 = inlined_call_operand.vmem [shape: bf16[32,32], index: 3, kind: input, shape index: {}]   ;;  %s1903_s1 = inlined_call_operand.vmem [shape: f32[8,32], index: 1, kind: input, shape index: {}, may-alias: {0,1}]   ;;  %s1904_s6 = inlined_call_operand.vmem [shape: f32[1,32], index: 6, kind: input, shape index: {}]   ;;  %s1905_s5 = inlined_call_operand.vmem [shape: f32[1,32], index: 5, kind: input, shape index: {}]   ;;  %s1906_s4 = inlined_call_operand.vmem [shape: bf16[32,32], index: 4, kind: input, shape index: {}]   ;;  %s1907_s7 = inlined_call_operand.vmem [shape: f32[1,32], index: 7, kind: input, shape index: {}]   ;;  %s1908_s8 = inlined_call_operand.vmem [shape: bf16[32,32], index: 8, kind: input, shape index: {}]   ;;  %s1909_s9 = inlined_call_operand.vmem [shape: f32[1,32], index: 9, kind: input, shape index: {}]   ;;  %s1910_s12 = inlined_call_operand.vmem [shape: bf16[32,128], index: 12, kind: input, shape index: {}]   ;;  %s1911_s14 = inlined_call_operand.vmem [shape: bf16[128,32], index: 14, kind: input, shape index: {}]   ;;  %s1912_s10 = inlined_call_operand.vmem [shape: f32[1,32], index: 10, kind: input, shape index: {}]   ;;  %s1913_s11 = inlined_call_operand.vmem [shape: f32[1,32], index: 11, kind: input, shape index: {}]   ;;  %s1914_s13 = inlined_call_operand.vmem [shape: f32[1,128], index: 13, kind: input, shape index: {}]   ;;  %s1915_s15 = inlined_call_operand.vmem [shape: f32[1,32], index: 15, kind: input, shape index: {}]   ;;  %s1916_s18 = inlined_call_operand.vmem [shape: bf16[32,128], index: 18, kind: input, shape index: {}]   ;;  %s1917_s21 = inlined_call_operand.vmem [shape: f32[8,128], index: 21, kind: output, shape index: {1}]   ;;  %s1918_s16 = inlined_call_operand.vmem [shape: f32[1,32], index: 16, kind: input, shape index: {}]   ;;  %s1919_s17 = inlined_call_operand.vmem [shape: f32[1,32], index: 17, kind: input, shape index: {}]   ;;  %s1920_s19 = inlined_call_operand.vmem [shape: f32[1,128], index: 19, kind: input, shape index: {}]   ;;  %s1921_s20 = inlined_call_operand.vmem [shape: f32[8,128], index: 20, kind: output, shape index: {0}]  }
   0x1   :  { %1924 = sst [smem:[#allocation3_spill]] %s1900_s2  ;;  %1349 = vmatprep.subr.bf16.mxu1 %v1526_v0  ;;  %1353 = vmatprep.mubr.msk.bf16.mxu1 %vm1527_vm0, %v1526_v0  ;;  %v1490_v24 = vld [vmem:[%s1906_s4] sm:$0xff]   ;;  %v1491_v25 = vld [vmem:[%s1906_s4 + $0x8] sm:$0xff]   ;;  %vm339_vm3 = vcmask 1043456   ;;  %vm1166_vm4 = vcmask 257024  }
   0x2   :  { %1925 = sst [smem:[#allocation4_spill]] %s1901_s0  ;;  %s1930_s26 = sld [smem:[#allocation3_spill]]  ;;  %1365 = vmatprep.subr.bf16.mxu0 %v1526_v0  ;;  %1369 = vmatprep.mubr.msk.bf16.mxu0 %vm1527_vm0, %v1526_v0  ;;  %v1263_v50 = vld [vmem:[%s1907_s7] ss:$0 sm:$0xff]  ;;  %v501_v63 = vld [vmem:[%s1908_s8 + $0x4] sm:$0xf] }
   0x3   :  { %1926 = sst [smem:[#allocation5_spill]] %s1902_s3  ;;  %s1931_s2 = sld [smem:[#allocation4_spill]]  ;;  %1366 = vmatpush3.bf16.msra.mxu0 %v1490_v24 }
   0x4   :  { %1927 = sst [smem:[#allocation6_spill]] %s1903_s1  ;;  %1367 = vmatprep.subr.bf16.mxu0 %v1526_v0  ;;  %s1529_s0 = smov 112  }
   0x5   :  { %1928 = sst [smem:[#allocation7_spill]] %s1904_s6  ;;  %s1933_s3 = sld [smem:[#allocation6_spill]] }
   0x6   :  { %1929 = sst [smem:[#allocation8_spill]] %s1905_s5  ;;  %s1932_s5 = sld [smem:[#allocation5_spill]] }
   0x7   :  { %s1934_s27 = sld [smem:[#allocation7_spill]]  ;;  %s1935_s29 = sld [smem:[#allocation8_spill]]  ;;  %1368 = vmatpush3.bf16.msra.mxu0 %v1491_v25 }
   0x8   :  { %v1486_v1 = vld [vmem:[%s1930_s26] sm:$0xff]   ;;  %v1487_v2 = vld [vmem:[%s1930_s26 + $0x8] sm:$0xff]   ;;  %1379 = vmatprep.subr.bf16.mxu0 %v1526_v0  ;;  %s1530_s26 = smov 104  }
   0x9   :  { %1350 = vmatpush3.bf16.msra.mxu1 %v1486_v1  ;;  %v1656_v3 = vld [vmem:[%s1931_s2] sm:$0xff]  ;;  %s1528_s2 = smov 120   ;;  %v506_v1 = vsel %vm339_vm3, %v501_v63, 0 }
   0xa   :  { %1351 = vmatprep.subr.bf16.mxu1 %v1526_v0  ;;  %v74_v4 = vpack.c.bf16 %v1656_v3, %v1656_v3 }
   0xb   :  { %v73_v7 = vld [vmem:[%s1933_s3] sm:$0xff] }
   0xc   :  { %v1488_v5 = vld [vmem:[%s1932_s5] sm:$0xff]   ;;  %v1489_v6 = vld [vmem:[%s1932_s5 + $0x8] sm:$0xff]   ;;  %v75_v8 = vpack.c.bf16 %v73_v7, %v73_v7 }
   0xd   :  { %1352 = vmatpush3.bf16.msra.mxu1 %v1487_v2  ;;  %v1259_v13 = vld [vmem:[%s1934_s27] ss:$0 sm:$0xff] }
   0xe   :  { %1357 = vmatprep.subr.bf16.mxu1 %v1526_v0  ;;  %v1255_v14 = vld [vmem:[%s1935_s29] ss:$0 sm:$0xff]  ;;  %1370 = vmatmul.mubr.msk.bf16.vlgmr.msra.gmra.mrb[0].mxu0 %vm99_vm1, %v75_v8 }
   0xf   :  { %1381 = vmatprep.mubr.msk.bf16.mxu0 %vm1527_vm0, %v1526_v0  ;;  %v384_v7 = vld [vmem:[%s1908_s8] sm:$0xf] }
  0x10   :  { %1354 = vmatmul.mubr.msk.bf16.vlgmr.msra.gmra.mrb[0].mxu1 %vm99_vm1, %v74_v4 }
  0x11   :  { %1358 = vmatpush3.bf16.msra.mxu1 %v1488_v5  ;;  %1361 = vmatprep.mubr.msk.bf16.mxu1 %vm1527_vm0, %v1526_v0 }
  0x12   :  { %1359 = vmatprep.subr.bf16.mxu1 %v1526_v0 }
  0x15   :  { %1360 = vmatpush3.bf16.msra.mxu1 %v1489_v6 }
  0x16   :  { %1373 = vmatprep.subr.bf16.mxu1 %v1526_v0 }
  0x18   :  { %1362 = vmatmul.mubr.msk.bf16.vlgmr.msra.gmra.mrb[4].mxu1 %vm99_vm1, %v75_v8 }
  0x19   :  { %1375 = vmatprep.mubr.msk.bf16.mxu1 %vm1527_vm0, %v1526_v0 }
  0xe1   :  { %v266_v44 = vpop.f32.mrb[0].mxu0 }
  0xe2   :  { %v1371_v45 = vpop.f32.mrb[1].mxu0  ;;  %v267_v51 = vadd.f32 %v1263_v50, %v266_v44 }
  0xe3   :  { %v137_v9 = vpop.f32.mrb[0].mxu1  ;;  %v269_v46 = vpop.f32.mrb[2].mxu0 }
  0xe4   :  { %v1355_v10 = vpop.f32.mrb[1].mxu1  ;;  %v138_v19 = vadd.f32 %v1255_v14, %v137_v9  ;;  %v1372_v47 = vpop.f32.mrb[3].mxu0  ;;  %v1722_v52 = vpack.c.bf16 %v267_v51, %v267_v51 }
  0xe5   :  { %v140_v11 = vpop.f32.mrb[2].mxu1  ;;  %v552_v10 = vsel %vm339_vm3, %v384_v7, 0 }
  0xe6   :  { %v1356_v12 = vpop.f32.mrb[3].mxu1  ;;  %v1691_v23 = vpack.c.bf16 %v138_v19, %v138_v19  ;;  %v341_v53 = vsel %vm339_vm3, %v1722_v52, 0 }
  0xe7   :  { %1380 = vmatpush3.bf16.msra.mxu0 %v341_v53 }
  0xe8   :  { %1391 = vmatprep.subr.bf16.mxu0 %v1526_v0 }
  0xeb   :  { %v203_v15 = vpop.f32.mrb[4].mxu1 }
  0xec   :  { %v204_v16 = vadd.f32 %v1259_v13, %v203_v15  ;;  %v1363_v17 = vpop.f32.mrb[5].mxu1 }
  0xed   :  { %v206_v18 = vpop.f32.mrb[6].mxu1 }
  0xee   :  { %v1685_v20 = vpack.c.bf16 %v204_v16, %v204_v16  ;;  %v1364_v21 = vpop.f32.mrb[7].mxu1 }
  0xf0   :  { %389 = vrot.lane.b32.xlu0 %v1685_v20, %s1528_s2  ;;  %v280_v22 = vsel %vm275_vm2, %v1685_v20, 0 }
  0xf1   :  { %1374 = vmatpush3.bf16.xpose.msra.mxu1 %v280_v22 }
  0xf2   :  { %1385 = vmatprep.subr.bf16.mxu1 %v1526_v0 }
  0xf4   :  { %386 = vrot.lane.b32.xlu0 %v1691_v23, %s1528_s2 }
  0xf8   :  { %1376 = vmatmul.mubr.msk.bf16.vlgmr.msra.gmra.mrb[8].mxu1 %vm275_vm2, %v1691_v23 }
  0xf9   :  { %1387 = vmatprep.mubr.msk.bf16.mxu1 %vm1527_vm0, %v1526_v0 }
 0x162   :  { %v390_v26 = vpop.permute.xlu0 %389 }
 0x163   :  { %v395_v27 = vsel %vm275_vm2, %v390_v26, 0 }
 0x164   :  { %1386 = vmatpush3.bf16.xpose.msra.mxu1 %v395_v27 }
 0x165   :  { %1397 = vmatprep.subr.bf16.mxu1 %v1526_v0 }
 0x166   :  { %v387_v28 = vpop.permute.xlu0 %386 }
 0x16b   :  { %1388 = vmatmul.mubr.msk.bf16.vlgmr.msra.gmra.mrb[12].mxu1 %vm275_vm2, %v387_v28 }
 0x16c   :  { %1399 = vmatprep.mubr.msk.bf16.mxu1 %vm1527_vm0, %v1526_v0  ;;  %1398 = vmatpush3.bf16.msra.mxu1 %v506_v1 }
 0x16d   :  { %1409 = vmatprep.subr.bf16.mxu1 %v1526_v0 }
 0x1cb   :  { %v316_v29 = vpop.f32.mrb[8].mxu1 }
 0x1cc   :  { %v322_v30 = vmul.f32 0.35355338, %v316_v29  ;;  %v1377_v31 = vpop.f32.mrb[9].mxu1 }
 0x1cd   :  { %v319_v32 = vpop.f32.mrb[10].mxu1 }
 0x1ce   :  { %v1378_v33 = vpop.f32.mrb[11].mxu1  ;;  %v323_v34 = vsel %vm275_vm2, %v322_v30, -inf }
 0x1cf   :  { %324 = vmax.xlane.f32.xlu1 %v323_v34 }
 0x23e   :  { %v431_v35 = vpop.f32.mrb[12].mxu1 }
 0x23f   :  { %v437_v36 = vmul.f32 0.35355338, %v431_v35  ;;  %v1389_v37 = vpop.f32.mrb[13].mxu1 }
 0x240   :  { %v434_v38 = vpop.f32.mrb[14].mxu1 }
 0x241   :  { %v1390_v39 = vpop.f32.mrb[15].mxu1  ;;  %v438_v40 = vsel %vm275_vm2, %v437_v36, -inf }
 0x242   :  { %439 = vmax.xlane.f32.xlu1 %v438_v40 }
 0x25c   :  { %v325_v41 = vpop.xlane.xlu1 %324 }
 0x25d   :  { %v326_v42 = vsub.f32 %v322_v30, %v325_v41 }
 0x25f   :  { %v327_v43 = vmul.f32 1.442695, %v326_v42 }
 0x261   :  { %1504 = vpow2.f32 %v327_v43 }
 0x26b   :  { %v1505_v48 = vpop.eup %1504 }
 0x26c   :  { %v329_v49 = vsel %vm275_vm2, %v1505_v48, 0.0 }
 0x26d   :  { %330 = vadd.xlane.f32.xlu0 %v329_v49 }
 0x283   :  { %658 = vrot.lane.b32.xlu0 %v1722_v52, %s1529_s0 }
 0x2cf   :  { %v440_v54 = vpop.xlane.xlu1 %439 }
 0x2d0   :  { %v441_v55 = vsub.f32 %v437_v36, %v440_v54 }
 0x2d2   :  { %v442_v56 = vmul.f32 1.442695, %v441_v55 }
 0x2d4   :  { %1506 = vpow2.f32 %v442_v56 }
 0x2de   :  { %v1507_v57 = vpop.eup %1506 }
 0x2df   :  { %v444_v58 = vsel %vm275_vm2, %v1507_v57, 0.0 }
 0x2e0   :  { %445 = vadd.xlane.f32.xlu1 %v444_v58 }
 0x2f1   :  { %452 = vrot.lane.b32.xlu1 %v1722_v52, %s1528_s2 }
 0x2f5   :  { %596 = vrot.lane.b32.xlu1 %v1685_v20, %s1529_s0 }
 0x2f9   :  { %594 = vrot.lane.b32.xlu1 %v1691_v23, %s1529_s0 }
 0x2fa   :  { %v331_v59 = vpop.xlane.xlu0 %330 }
 0x2fb   :  { %1508 = vrcp.f32 %v331_v59 }
 0x2fe   :  { %v659_v11 = vpop.permute.xlu0 %658 }
 0x2ff   :  { %v664_v16 = vsel %vm339_vm3, %v659_v11, 0 }
 0x305   :  { %v1509_v60 = vpop.eup %1508 }
 0x306   :  { %v1733_v61 = vmul.f32 %v1509_v60, %v1505_v48 }
 0x308   :  { %v335_v62 = vpack.c.bf16 %v1733_v61, %v1733_v61 }
 0x30a   :  { %1382 = vmatmul.mubr.msk.bf16.vlgmr.msra.gmra.mrb[4].mxu0 %vm275_vm2, %v335_v62 }
 0x30b   :  { %1393 = vmatprep.mubr.msk.bf16.mxu0 %vm1527_vm0, %v1526_v0 }
 0x36d   :  { %v446_v2 = vpop.xlane.xlu1 %445 }
 0x36e   :  { %1510 = vrcp.f32 %v446_v2 }
 0x371   :  { %v453_v4 = vpop.permute.xlu1 %452 }
 0x372   :  { %v458_v5 = vsel %vm339_vm3, %v453_v4, 0 }
 0x373   :  { %1392 = vmatpush3.bf16.msra.mxu0 %v458_v5 }
 0x374   :  { %1403 = vmatprep.subr.bf16.mxu0 %v1526_v0 }
 0x375   :  { %v597_v18 = vpop.permute.xlu1 %596 }
 0x376   :  { %v602_v25 = vsel %vm275_vm2, %v597_v18, 0 }
 0x378   :  { %v1511_v6 = vpop.eup %1510 }
 0x379   :  { %v448_v8 = vmul.f32 %v1511_v6, %v1507_v57  ;;  %v595_v27 = vpop.permute.xlu1 %594 }
 0x37b   :  { %v450_v9 = vpack.c.bf16 %v448_v8, %v448_v8  ;;  %v449_v51 = vadd.f32 %v448_v8, %v1733_v61 }
 0x37d   :  { %1394 = vmatmul.mubr.msk.bf16.vlgmr.msra.gmra.mrb[8].mxu0 %vm275_vm2, %v450_v9 }
 0x37e   :  { %1404 = vmatpush3.bf16.msra.mxu0 %v552_v10  ;;  %1405 = vmatprep.mubr.msk.bf16.mxu0 %vm1527_vm0, %v1526_v0 }
 0x37f   :  { %1415 = vmatprep.subr.bf16.mxu0 %v1526_v0 }
 0x3dd   :  { %v377_v12 = vpop.f32.mrb[4].mxu0 }
 0x3de   :  { %v383_v13 = vpack.c.bf16 %v377_v12, %v377_v12  ;;  %v1383_v14 = vpop.f32.mrb[5].mxu0  ;;  %v868_v12 = vld [vmem:[%s1908_s8 + $0xc] sm:$0xf] }
 0x3df   :  { %v380_v15 = vpop.f32.mrb[6].mxu0 }
 0x3e0   :  { %v1384_v17 = vpop.f32.mrb[7].mxu0  ;;  %1406 = vmatmul.mubr.msk.bf16.vlgmr.msra.gmra.mrb[12].mxu0 %vm275_vm2, %v383_v13  ;;  %v873_v13 = vsel %vm339_vm3, %v868_v12, 0 }
 0x3e1   :  { %1416 = vmatpush3.bf16.msra.mxu0 %v664_v16  ;;  %1417 = vmatprep.mubr.msk.bf16.mxu0 %vm1527_vm0, %v1526_v0 }
 0x3e2   :  { %1427 = vmatprep.subr.bf16.mxu0 %v1526_v0 }
 0x450   :  { %v494_v19 = vpop.f32.mrb[8].mxu0 }
 0x451   :  { %v500_v21 = vpack.c.bf16 %v494_v19, %v494_v19  ;;  %v1395_v22 = vpop.f32.mrb[9].mxu0 }
 0x452   :  { %v497_v24 = vpop.f32.mrb[10].mxu0 }
 0x453   :  { %v1396_v26 = vpop.f32.mrb[11].mxu0  ;;  %1400 = vmatmul.mubr.msk.bf16.vlgmr.msra.gmra.mrb[16].mxu1 %vm275_vm2, %v500_v21 }
 0x454   :  { %1410 = vmatpush3.bf16.xpose.msra.mxu1 %v602_v25  ;;  %1411 = vmatprep.mubr.msk.bf16.mxu1 %vm1527_vm0, %v1526_v0 }
 0x455   :  { %1421 = vmatprep.subr.bf16.mxu1 %v1526_v0 }
 0x45b   :  { %1412 = vmatmul.mubr.msk.bf16.vlgmr.msra.gmra.mrb[20].mxu1 %vm275_vm2, %v595_v27 }
 0x45c   :  { %1423 = vmatprep.mubr.msk.bf16.mxu1 %vm1527_vm0, %v1526_v0 }
 0x4b3   :  { %v588_v28 = vpop.f32.mrb[12].mxu0 }
 0x4b4   :  { %v1407_v29 = vpop.f32.mrb[13].mxu0 }
 0x4b5   :  { %v591_v30 = vpop.f32.mrb[14].mxu0 }
 0x4b6   :  { %v1408_v31 = vpop.f32.mrb[15].mxu0 }
 0x526   :  { %v542_v32 = vpop.f32.mrb[16].mxu1 }
 0x527   :  { %v1768_v33 = vadd.f32 %v588_v28, %v542_v32  ;;  %v1401_v34 = vpop.f32.mrb[17].mxu1 }
 0x528   :  { %v545_v35 = vpop.f32.mrb[18].mxu1 }
 0x529   :  { %v1402_v36 = vpop.f32.mrb[19].mxu1 }
 0x52e   :  { %v638_v37 = vpop.f32.mrb[20].mxu1 }
 0x52f   :  { %v644_v38 = vmul.f32 0.35355338, %v638_v37  ;;  %v1413_v39 = vpop.f32.mrb[21].mxu1 }
 0x530   :  { %v641_v40 = vpop.f32.mrb[22].mxu1 }
 0x531   :  { %v1414_v41 = vpop.f32.mrb[23].mxu1  ;;  %v645_v42 = vsel %vm275_vm2, %v644_v38, -inf }
 0x532   :  { %646 = vmax.xlane.f32.xlu1 %v645_v42 }
 0x5bf   :  { %v647_v43 = vpop.xlane.xlu1 %646 }
 0x5c0   :  { %v648_v44 = vsub.f32 %v644_v38, %v647_v43 }
 0x5c2   :  { %v649_v45 = vmul.f32 1.442695, %v648_v44 }
 0x5c4   :  { %1512 = vpow2.f32 %v649_v45 }
 0x5ce   :  { %v1513_v46 = vpop.eup %1512 }
 0x5cf   :  { %v651_v47 = vsel %vm275_vm2, %v1513_v46, 0.0 }
 0x5d0   :  { %652 = vadd.xlane.f32.xlu0 %v651_v47  ;;  %v1493_v47 = vld [vmem:[%s1910_s12 + $0x8] sm:$0xff]  }
 0x5e6   :  { %757 = vrot.lane.b32.xlu0 %v1685_v20, %s1530_s26 }
 0x5ea   :  { %755 = vrot.lane.b32.xlu0 %v1691_v23, %s1530_s26  ;;  %v707_v23 = vld [vmem:[%s1908_s8 + $0x8] sm:$0xf] }
 0x5eb   :  { %v712_v57 = vsel %vm339_vm3, %v707_v23, 0  ;;  %v1280_v23 = vld [vmem:[%s1912_s10] ss:$0 sm:$0xff] }
 0x5ec   :  { %1422 = vmatpush3.bf16.msra.mxu1 %v712_v57 }
 0x5ed   :  { %1433 = vmatprep.subr.bf16.mxu1 %v1526_v0 }
 0x65d   :  { %v653_v48 = vpop.xlane.xlu0 %652 }
 0x65e   :  { %1514 = vrcp.f32 %v653_v48  ;;  %v1495_v48 = vld [vmem:[%s1911_s14 + $0x8] sm:$0xff]  }
 0x661   :  { %v758_v53 = vpop.permute.xlu0 %757 }
 0x662   :  { %v763_v56 = vsel %vm275_vm2, %v758_v53, 0  ;;  %v1499_v53 = vld [vmem:[%s1911_s14 + $0x28] sm:$0xff]  }
 0x665   :  { %v756_v20 = vpop.permute.xlu0 %755 }
 0x668   :  { %v1515_v49 = vpop.eup %1514 }
 0x669   :  { %v655_v50 = vmul.f32 %v1515_v49, %v1513_v46  ;;  %v1492_v46 = vld [vmem:[%s1910_s12] sm:$0xff]   ;;  %v1496_v49 = vld [vmem:[%s1911_s14 + $0x10] sm:$0xff]  }
 0x66b   :  { %v657_v54 = vpack.c.bf16 %v655_v50, %v655_v50  ;;  %v656_v55 = vadd.f32 %v655_v50, %v449_v51  ;;  %v1497_v50 = vld [vmem:[%s1911_s14 + $0x18] sm:$0xff]   ;;  %v1498_v51 = vld [vmem:[%s1911_s14 + $0x20] sm:$0xff]  }
 0x66d   :  { %1418 = vmatmul.mubr.msk.bf16.vlgmr.msra.gmra.mrb[16].mxu0 %vm275_vm2, %v657_v54 }
 0x66e   :  { %1428 = vmatpush3.bf16.xpose.msra.mxu0 %v763_v56  ;;  %1429 = vmatprep.mubr.msk.bf16.mxu0 %vm1527_vm0, %v1526_v0 }
 0x66f   :  { %1439 = vmatprep.subr.bf16.mxu0 %v1526_v0 }
 0x675   :  { %1430 = vmatmul.mubr.msk.bf16.vlgmr.msra.gmra.mrb[20].mxu0 %vm275_vm2, %v756_v20 }
 0x676   :  { %1441 = vmatprep.mubr.msk.bf16.mxu0 %vm1527_vm0, %v1526_v0  ;;  %1440 = vmatpush3.bf16.msra.mxu0 %v873_v13 }
 0x677   :  { %1453 = vmatprep.subr.bf16.mxu0 %v1526_v0 }
 0x740   :  { %v700_v58 = vpop.f32.mrb[16].mxu0 }
 0x741   :  { %v706_v59 = vpack.c.bf16 %v700_v58, %v700_v58  ;;  %v1419_v60 = vpop.f32.mrb[17].mxu0  ;;  %v1281_v58 = vld [vmem:[%s1913_s11] ss:$0 sm:$0xff] }
 0x742   :  { %v703_v61 = vpop.f32.mrb[18].mxu0 }
 0x743   :  { %v1420_v62 = vpop.f32.mrb[19].mxu0  ;;  %1424 = vmatmul.mubr.msk.bf16.vlgmr.msra.gmra.mrb[24].mxu1 %vm275_vm2, %v706_v59 }
 0x744   :  { %1435 = vmatprep.mubr.msk.bf16.mxu1 %vm1527_vm0, %v1526_v0  ;;  %v1500_v62 = vld [vmem:[%s1911_s14 + $0x30] sm:$0xff]  }
 0x748   :  { %v799_v63 = vpop.f32.mrb[20].mxu0 }
 0x749   :  { %v805_v1 = vmul.f32 0.35355338, %v799_v63  ;;  %v1431_v2 = vpop.f32.mrb[21].mxu0  ;;  %v1501_v63 = vld [vmem:[%s1911_s14 + $0x38] sm:$0xff]  }
 0x74a   :  { %v802_v4 = vpop.f32.mrb[22].mxu0 }
 0x74b   :  { %v1432_v5 = vpop.f32.mrb[23].mxu0  ;;  %v806_v6 = vsel %vm275_vm2, %v805_v1, -inf }
 0x74c   :  { %807 = vmax.xlane.f32.xlu0 %v806_v6 }
 0x7d9   :  { %v808_v7 = vpop.xlane.xlu0 %807 }
 0x7da   :  { %v809_v8 = vsub.f32 %v805_v1, %v808_v7  ;;  %v1282_v1 = vld [vmem:[%s1914_s13] ss:$0 sm:$0xff] }
 0x7dc   :  { %v810_v9 = vmul.f32 1.442695, %v809_v8 }
 0x7de   :  { %1516 = vpow2.f32 %v810_v9 }
 0x7e8   :  { %v1517_v10 = vpop.eup %1516 }
 0x7e9   :  { %v812_v11 = vsel %vm275_vm2, %v1517_v10, 0.0 }
 0x7ea   :  { %813 = vadd.xlane.f32.xlu1 %v812_v11 }
 0x7fb   :  { %819 = vrot.lane.b32.xlu1 %v1722_v52, %s1530_s26 }
 0x816   :  { %v748_v14 = vpop.f32.mrb[24].mxu1 }
 0x817   :  { %v754_v15 = vadd.f32 %v748_v14, %v1768_v33  ;;  %v1425_v16 = vpop.f32.mrb[25].mxu1  ;;  %v1279_v33 = vld [vmem:[%s1909_s9] ss:$0 sm:$0xff] }
 0x818   :  { %v751_v17 = vpop.f32.mrb[26].mxu1 }
 0x819   :  { %v1426_v18 = vpop.f32.mrb[27].mxu1 }
 0x877   :  { %v814_v19 = vpop.xlane.xlu1 %813 }
 0x878   :  { %1518 = vrcp.f32 %v814_v19 }
 0x87b   :  { %v820_v21 = vpop.permute.xlu1 %819 }
 0x87c   :  { %v825_v52 = vsel %vm339_vm3, %v820_v21, 0 }
 0x87d   :  { %1434 = vmatpush3.bf16.msra.mxu1 %v825_v52 }
 0x87e   :  { %1445 = vmatprep.subr.bf16.mxu1 %v1526_v0 }
 0x882   :  { %v1519_v22 = vpop.eup %1518 }
 0x883   :  { %v816_v24 = vmul.f32 %v1519_v22, %v1517_v10  ;;  %v1286_v10 = vld [vmem:[%s1915_s15] ss:$0 sm:$0xff] }
 0x885   :  { %v818_v25 = vpack.c.bf16 %v816_v24, %v816_v24  ;;  %v1805_v26 = vadd.f32 %v816_v24, %v656_v55 }
 0x887   :  { %1436 = vmatmul.mubr.msk.bf16.vlgmr.msra.gmra.mrb[28].mxu1 %vm275_vm2, %v818_v25  ;;  %v1168_v18 = vmul.f32 0.25, %v1805_v26  ;;  %v1503_v26 = vld [vmem:[%s1916_s18 + $0x8] sm:$0xff]  }
 0x888   :  { %1449 = vmatprep.mubr.msk.bf16.mxu1 %vm1527_vm0, %v1526_v0  ;;  %1446 = vmatpush3.bf16.msra.mxu1 %v1492_v46 }
 0x889   :  { %1447 = vmatprep.subr.bf16.mxu1 %v1526_v0  ;;  %v1169_v19 = vadd.f32 1e-10, %v1168_v18 }
 0x88c   :  { %1448 = vmatpush3.bf16.msra.mxu1 %v1493_v47 }
 0x88d   :  { %1473 = vmatprep.subr.bf16.mxu1 %v1526_v0 }
 0x95a   :  { %v861_v27 = vpop.f32.mrb[28].mxu1 }
 0x95b   :  { %v867_v28 = vpack.c.bf16 %v861_v27, %v861_v27  ;;  %v1437_v29 = vpop.f32.mrb[29].mxu1 }
 0x95c   :  { %v864_v30 = vpop.f32.mrb[30].mxu1 }
 0x95d   :  { %v1438_v31 = vpop.f32.mrb[31].mxu1  ;;  %1442 = vmatmul.mubr.msk.bf16.vlgmr.msra.gmra.mrb[24].mxu0 %vm275_vm2, %v867_v28 }
 0x95e   :  { %1469 = vmatprep.mubr.msk.bf16.mxu0 %vm1527_vm0, %v1526_v0  ;;  %v1502_v31 = vld [vmem:[%s1916_s18] sm:$0xff]  }
 0xa30   :  { %v909_v32 = vpop.f32.mrb[24].mxu0 }
 0xa31   :  { %v915_v34 = vadd.f32 %v909_v32, %v754_v15  ;;  %v1443_v35 = vpop.f32.mrb[25].mxu0 }
 0xa32   :  { %v912_v36 = vpop.f32.mrb[26].mxu0 }
 0xa33   :  { %v923_v37 = vadd.f32 %v1279_v33, %v915_v34  ;;  %v1444_v38 = vpop.f32.mrb[27].mxu0 }
 0xa34   :  { %v1295_v38 = vld [vmem:[%s1918_s16] ss:$0 sm:$0xff] }
 0xa35   :  { %v924_v39 = vadd.f32 %v923_v37, %v1656_v3  ;;  %v1494_v3 = vld [vmem:[%s1911_s14] sm:$0xff]  }
 0xa36   :  { %1454 = vmatpush3.bf16.msra.mxu0 %v1494_v3 }
 0xa37   :  { %v927_v40 = vsel %vm99_vm1, %v924_v39, 0.0  ;;  %1455 = vmatprep.subr.bf16.mxu0 %v1526_v0 }
 0xa38   :  { %928 = vadd.xlane.f32.xlu1 %v927_v40 }
 0xa3a   :  { %1456 = vmatpush3.bf16.msra.mxu0 %v1495_v48 }
 0xa3b   :  { %1457 = vmatprep.subr.bf16.mxu0 %v1526_v0 }
 0xa3e   :  { %1458 = vmatpush3.bf16.msra.mxu0 %v1496_v49 }
 0xa3f   :  { %1459 = vmatprep.subr.bf16.mxu0 %v1526_v0 }
 0xa42   :  { %1460 = vmatpush3.bf16.msra.mxu0 %v1497_v50 }
 0xa43   :  { %1461 = vmatprep.subr.bf16.mxu0 %v1526_v0 }
 0xa46   :  { %1462 = vmatpush3.bf16.msra.mxu0 %v1498_v51 }
 0xa47   :  { %1463 = vmatprep.subr.bf16.mxu0 %v1526_v0 }
 0xa4a   :  { %1464 = vmatpush3.bf16.msra.mxu0 %v1499_v53 }
 0xa4b   :  { %1465 = vmatprep.subr.bf16.mxu0 %v1526_v0 }
 0xa4e   :  { %1466 = vmatpush3.bf16.msra.mxu0 %v1500_v62 }
 0xa4f   :  { %1467 = vmatprep.subr.bf16.mxu0 %v1526_v0 }
 0xa52   :  { %1468 = vmatpush3.bf16.msra.mxu0 %v1501_v63 }
 0xac5   :  { %v929_v41 = vpop.xlane.xlu1 %928 }
 0xac6   :  { %v931_v42 = vmul.f32 0.03125, %v929_v41 }
 0xac8   :  { %v932_v43 = vsub.f32 %v924_v39, %v931_v42 }
 0xaca   :  { %v933_v44 = vmul.f32 %v932_v43, %v932_v43 }
 0xacc   :  { %v934_v45 = vsel %vm99_vm1, %v933_v44, 0.0  ;;  %v1297_v44 = vld [vmem:[%s1920_s19] ss:$0 sm:$0xff] }
 0xacd   :  { %935 = vadd.xlane.f32.xlu0 %v934_v45 }
 0xb5a   :  { %v936_v54 = vpop.xlane.xlu0 %935 }
 0xb5b   :  { %v937_v55 = vmul.f32 0.03125, %v936_v54 }
 0xb5d   :  { %v938_v56 = vadd.f32 1e-05, %v937_v55 }
 0xb5f   :  { %1520 = vrsqrt.f32 %v938_v56 }
 0xb60   :  { %1522 = vlog2.f32 %v1169_v19 }
 0xb69   :  { %v1521_v20 = vpop.eup %1520 }
 0xb6a   :  { %v940_v57 = vmul.f32 %v1521_v20, %v932_v43  ;;  %v1523_v21 = vpop.eup %1522 }
 0xb6b   :  { %v1171_v25 = vmul.f32 0.6931472, %v1523_v21 }
 0xb6c   :  { %v947_v59 = vmul.f32 %v1280_v23, %v940_v57 }
 0xb6d   :  { %v1172_v29 = vmul.f32 %v1171_v25, %v1168_v18 }
 0xb6e   :  { %v954_v60 = vadd.f32 %v1281_v58, %v947_v59 }
 0xb6f   :  { %v1173_v30 = vsel %vm275_vm2, %v1172_v29, 0.0 }
 0xb70   :  { %v955_v61 = vpack.c.bf16 %v954_v60, %v954_v60 }
 0xb72   :  { %1450 = vmatmul.mubr.msk.bf16.vlgmr.msra.gmra.mrb[32].mxu1 %vm99_vm1, %v955_v61 }
 0xb73   :  { %1477 = vmatprep.mubr.msk.bf16.mxu1 %vm1527_vm0, %v1526_v0  ;;  %1474 = vmatpush3.bf16.msra.mxu1 %v1502_v31 }
 0xb74   :  { %1475 = vmatprep.subr.bf16.mxu1 %v1526_v0  ;;  %v1296_v0 = vld [vmem:[%s1919_s17] ss:$0 sm:$0xff] }
 0xb77   :  { %1476 = vmatpush3.bf16.msra.mxu1 %v1503_v26 }
 0xc45   :  { %v1016_v2 = vpop.f32.mrb[32].mxu1 }
 0xc46   :  { %v1017_v4 = vadd.f32 %v1282_v1, %v1016_v2  ;;  %v1451_v5 = vpop.f32.mrb[33].mxu1 }
 0xc47   :  { %v1019_v6 = vpop.f32.mrb[34].mxu1 }
 0xc48   :  { %v1022_v7 = vmax.f32 %v1017_v4, 0.0  ;;  %v1452_v8 = vpop.f32.mrb[35].mxu1 }
 0xc4a   :  { %v1023_v9 = vpack.c.bf16 %v1022_v7, %v1022_v7 }
 0xc4c   :  { %1470 = vmatmul.mubr.bf16.vlgmr.msra.gmra.mrb[28].mxu0 %v1023_v9 }
 0xd1f   :  { %v1129_v11 = vpop.f32.mrb[28].mxu0 }
 0xd20   :  { %v1130_v12 = vadd.f32 %v1286_v10, %v1129_v11  ;;  %v1471_v13 = vpop.f32.mrb[29].mxu0 }
 0xd21   :  { %v1132_v14 = vpop.f32.mrb[30].mxu0 }
 0xd22   :  { %v1472_v15 = vpop.f32.mrb[31].mxu0  ;;  %v1135_v16 = vadd.f32 %v1130_v12, %v954_v60 }
 0xd24   :  { %v1138_v17 = vsel %vm99_vm1, %v1135_v16, 0.0 }
 0xd25   :  { %1139 = vadd.xlane.f32.xlu0 %v1138_v17 }
 0xdb2   :  { %v1140_v52 = vpop.xlane.xlu0 %1139 }
 0xdb3   :  { %v1141_v22 = vmul.f32 0.03125, %v1140_v52 }
 0xdb5   :  { %v1142_v24 = vsub.f32 %v1135_v16, %v1141_v22 }
 0xdb7   :  { %v1143_v27 = vmul.f32 %v1142_v24, %v1142_v24 }
 0xdb9   :  { %v1144_v28 = vsel %vm99_vm1, %v1143_v27, 0.0 }
 0xdba   :  { %1145 = vadd.xlane.f32.xlu0 %v1144_v28 }
 0xdbe   :  { %1174 = vadd.xlane.f32.xlu0 %v1173_v30 }
 0xe47   :  { %v1146_v32 = vpop.xlane.xlu0 %1145 }
 0xe48   :  { %v1147_v33 = vmul.f32 0.03125, %v1146_v32 }
 0xe4a   :  { %v1148_v34 = vadd.f32 1e-05, %v1147_v33 }
 0xe4b   :  { %v1175_v35 = vpop.xlane.xlu0 %1174 }
 0xe4c   :  { %1524 = vrsqrt.f32 %v1148_v34  ;;  %v1176_v36 = vsub.f32 0.0, %v1175_v35 }
 0xe4e   :  { %1177 = vst [vmem:[%s1917_s21] sm:$0xff] %v1176_v36 }
 0xe56   :  { %v1525_v37 = vpop.eup %1524 }
 0xe57   :  { %v1150_v39 = vmul.f32 %v1525_v37, %v1142_v24 }
 0xe59   :  { %v1157_v40 = vmul.f32 %v1295_v38, %v1150_v39 }
 0xe5b   :  { %v1164_v41 = vadd.f32 %v1296_v0, %v1157_v40 }
 0xe5d   :  { %v1165_v42 = vpack.c.bf16 %v1164_v41, %v1164_v41 }
 0xe5f   :  { %1167 = vst.msk [vmem:[#allocation2] sm:$0xf] %vm1166_vm4, %v1165_v42 }
 0xe66   :  { %v1178_v43 = vld [vmem:[#allocation2] sm:$0xf] }
 0xe67   :  { %1478 = vmatmul.mubr.msk.bf16.vlgmr.msra.gmra.mrb[36].mxu1 %vm99_vm1, %v1178_v43 }
 0xf3a   :  { %v1240_v45 = vpop.f32.mrb[36].mxu1 }
 0xf3b   :  { %v1241_v46 = vadd.f32 %v1297_v44, %v1240_v45  ;;  %v1479_v47 = vpop.f32.mrb[37].mxu1 }
 0xf3c   :  { %v1243_v3 = vpop.f32.mrb[38].mxu1 }
 0xf3d   :  { %1246 = vst [vmem:[%s1921_s20] sm:$0xff] %v1241_v46  ;;  %v1480_v48 = vpop.f32.mrb[39].mxu1 }

</bundles_post_ra>
